<compile_context>
chip_gen: v7x
topology: tpu7x:2x2x1
jax: 0.10.0
libtpu: 0.0.40
codegen_flags: <defaults>
</compile_context>

<pallas_src>
import functools

import jax
import jax.numpy as jnp
from jax.experimental import pallas as pl
from jax.experimental.pallas import tpu as pltpu


def _round_up(x: int, m: int) -> int:
    return ((x + m - 1) // m) * m


def _split_dim(size: int, cap: int, align: int):
    """Pad `size` to a multiple of `align`, split into equal tiles <= ~cap.

    Returns (tile, padded_size) with padded_size % tile == 0 and
    tile % align == 0.
    """
    aligned = _round_up(max(size, align), align)
    n_tiles = -(-aligned // cap)
    tile = _round_up(-(-aligned // n_tiles), align)
    return tile, tile * n_tiles


def _linear_kernel(x_ref, w_ref, b_ref, o_ref, acc_ref):
    # x_ref: [tm, tk] (f32 or bf16), w_ref: [tk, tn] bf16 (K-major),
    # b_ref: [1, tn] f32, o_ref: [tm, tn], acc_ref: [tm, tn] f32 scratch.
    k = pl.program_id(2)

    partial = jnp.dot(
        x_ref[...].astype(jnp.bfloat16),
        w_ref[...],
        preferred_element_type=jnp.float32,
    )

    @pl.when(k == 0)
    def _():
        acc_ref[...] = partial            # direct write: no zero + RMW

    @pl.when(k > 0)
    def _():
        acc_ref[...] += partial

    @pl.when(k == pl.num_programs(2) - 1)
    def _():
        o_ref[...] = (acc_ref[...] + b_ref[...]).astype(o_ref.dtype)


@functools.partial(jax.jit, static_argnums=(3, 4, 5, 6, 7))
def _linearizer_forward(x, w_prep, b_prep, f_in, f_out, tm_cap, tn, tk):
    b = x.shape[0]
    x_flat = x.reshape(b, -1)             # flatten non-batch dims (free glue)
    assert x_flat.shape[1] == f_in, "input feature size mismatch"

    k_pad, n_pad = w_prep.shape
    tm, m_pad = _split_dim(b, tm_cap, 16)  # 16: bf16 row-pack multiple

    # Only materialize a padded copy of x when shapes require it; fold the
    # bf16 cast into that same pass.  Otherwise pass x straight through and
    # cast in-kernel (saves one full HBM read+write of the activations).
    if (m_pad, k_pad) != x_flat.shape:
        x_in = jnp.zeros((m_pad, k_pad), dtype=jnp.bfloat16).at[:b, :f_in].set(
            x_flat.astype(jnp.bfloat16))
    else:
        x_in = x_flat

    grid = (m_pad // tm, n_pad // tn, k_pad // tk)

    out_padded = pl.pallas_call(
        _linear_kernel,
        out_shape=jax.ShapeDtypeStruct((m_pad, n_pad), x.dtype),
        grid_spec=pltpu.PrefetchScalarGridSpec(
            num_scalar_prefetch=0,
            grid=grid,
            in_specs=[
                pl.BlockSpec((tm, tk), lambda i, j, k: (i, k)),  # x tile
                pl.BlockSpec((tk, tn), lambda i, j, k: (k, j)),  # W tile (K-major)
                pl.BlockSpec((1, tn), lambda i, j, k: (0, j)),   # bias (resident over K)
            ],
            out_specs=pl.BlockSpec((tm, tn), lambda i, j, k: (i, j)),
            scratch_shapes=[pltpu.VMEM((tm, tn), jnp.float32)],
        ),
        compiler_params=pltpu.CompilerParams(
            dimension_semantics=("parallel", "parallel", "arbitrary"),
            vmem_limit_bytes=32 * 1024 * 1024,
        ),
    )(x_in, w_prep, b_prep)

    return out_padded[:b, :f_out]


class Linearizer:
    """Pallas-TPU equivalent of the PyTorch Linearizer module.

    The weight and bias are prepared exactly once at construction time
    (bf16 cast, padding, transpose to K-major [k_pad, n_pad]) and cached,
    so the per-call HBM traffic for the weight is the minimal 2 bytes/elt.
    """

    def __init__(self, weight, bias, *, tm_cap=256, tn_cap=512, tk_cap=2048):
        f_out, f_in = weight.shape          # PyTorch nn.Linear layout [out, in]
        self.f_in, self.f_out = f_in, f_out
        self.tm_cap = tm_cap

        # K tiling: 128-lane aligned.
        self.tk, self.k_pad = _split_dim(f_in, tk_cap, 128)

        # N tiling: for small f_out pad only to the bf16 sublane multiple (16)
        # and use a single full-width N tile (BlockSpec "equals full dim"
        # rule); masked output stores on a tiny output are negligible.
        n16 = _round_up(f_out, 16)
        if n16 <= tn_cap:
            self.tn = self.n_pad = n16
        else:
            self.tn, self.n_pad = _split_dim(f_out, tn_cap, 128)

        # One-time weight prep: bf16 cast + pad + transpose to K-major [K, N].
        w_prep = jnp.zeros((self.k_pad, self.n_pad), dtype=jnp.bfloat16)
        self.w_prepared = w_prep.at[:f_in, :f_out].set(
            weight.astype(jnp.bfloat16).T)
        b_prep = jnp.zeros((1, self.n_pad), dtype=jnp.float32)
        self.b_prepared = b_prep.at[0, :f_out].set(bias.astype(jnp.float32))

    def __call__(self, x):
        return _linearizer_forward(
            x, self.w_prepared, self.b_prepared,
            self.f_in, self.f_out, self.tm_cap, self.tn, self.tk)


if __name__ == "__main__":
    key = jax.random.PRNGKey(0)
    k_x, k_w, k_b = jax.random.split(key, 3)

    # Small shapes consistent with the module: B=2, C=4, H=W=16 -> in_features=1024
    B, C, H, W = 2, 4, 16, 16
    in_features = C * H * W
    out_features = 32

    x = jax.random.normal(k_x, (B, C, H, W), dtype=jnp.float32)

    # Deterministic params matching nn.Linear shapes (weight: [out, in], bias: [out]).
    bound = 1.0 / (in_features ** 0.5)
    weight = jax.random.uniform(
        k_w, (out_features, in_features), minval=-bound, maxval=bound,
        dtype=jnp.float32)
    bias = jax.random.uniform(
        k_b, (out_features,), minval=-bound, maxval=bound, dtype=jnp.float32)

    model = Linearizer(weight, bias)
    out = model(x)
    jax.block_until_ready(out)

    # Reference with matching bf16-input / f32-accumulate numerics.
    ref_bf16 = (
        x.reshape(B, -1).astype(jnp.bfloat16).astype(jnp.float32)
        @ weight.astype(jnp.bfloat16).astype(jnp.float32).T
        + bias
    )
    # Full-precision reference (loose tolerance covers the bf16 input cast).
    ref_f32 = x.reshape(B, -1) @ weight.T + bias

    assert out.shape == (B, out_features)
    assert jnp.allclose(out, ref_bf16, atol=2e-4, rtol=2e-4)
    assert jnp.allclose(out, ref_f32, atol=2e-2, rtol=2e-2)

    print("KERNEL_OK")
</pallas_src>

<mosaic_0001>
module attributes {stable_mosaic.version = 11 : i64} {
  func.func @_linear_kernel(%arg0: i32, %arg1: i32, %arg2: i32, %arg3: memref<16x1024xbf16, #tpu.memory_space<vmem>>, %arg4: memref<1024x32xbf16, #tpu.memory_space<vmem>>, %arg5: memref<1x32xf32, #tpu.memory_space<vmem>>, %arg6: memref<16x32xf32, #tpu.memory_space<vmem>>, %arg7: memref<16x32xf32, #tpu.memory_space<vmem>>) attributes {dimension_semantics = [#tpu.dimension_semantics<parallel>, #tpu.dimension_semantics<parallel>, #tpu.dimension_semantics<arbitrary>], iteration_bounds = array<i64: 1, 1, 1>, scalar_prefetch = 0 : i64, scratch_operands = 1 : i64, tpu.core_type = #tpu.core_type<tc>, window_params = [{transform_indices = @transform_0, window_bounds = array<i64: 16, 1024>}, {transform_indices = @transform_1, window_bounds = array<i64: 1024, 32>}, {transform_indices = @transform_2, window_bounds = array<i64: 1, 32>}, {transform_indices = @transform_3, window_bounds = array<i64: 16, 32>}]} {
    %c0 = arith.constant 0 : index
    %c0_0 = arith.constant 0 : index
    %0 = vector.load %arg3[%c0, %c0_0] : memref<16x1024xbf16, #tpu.memory_space<vmem>>, vector<16x1024xbf16>
    %c0_1 = arith.constant 0 : index
    %c0_2 = arith.constant 0 : index
    %1 = vector.load %arg4[%c0_1, %c0_2] : memref<1024x32xbf16, #tpu.memory_space<vmem>>, vector<1024x32xbf16>
    %cst = arith.constant dense<0.000000e+00> : vector<16x32xf32>
    %2 = tpu.matmul %0, %1, %cst {dimension_numbers = #tpu.dot_dimension_numbers<[1], [0], [0], [1], [0, 0, 1, 1], [], []>} : vector<16x1024xbf16>, vector<1024x32xbf16>, vector<16x32xf32> -> vector<16x32xf32>
    %c0_i32 = arith.constant 0 : i32
    %3 = arith.cmpi eq, %arg2, %c0_i32 : i32
    %4 = arith.extui %3 : i1 to i32
    %c0_i32_3 = arith.constant 0 : i32
    %5 = arith.cmpi ne, %4, %c0_i32_3 : i32
    scf.if %5 {
      %c0_8 = arith.constant 0 : index
      %c0_9 = arith.constant 0 : index
      %12 = vector.load %arg7[%c0_8, %c0_9] : memref<16x32xf32, #tpu.memory_space<vmem>>, vector<16x32xf32>
      tpu.vector_store %arg7[%c0_8, %c0_9], %2 {strides = array<i32>} : memref<16x32xf32, #tpu.memory_space<vmem>>, vector<16x32xf32>,
    } else {
    }
    %c0_i32_4 = arith.constant 0 : i32
    %6 = arith.cmpi sgt, %arg2, %c0_i32_4 : i32
    %7 = arith.extui %6 : i1 to i32
    %c0_i32_5 = arith.constant 0 : i32
    %8 = arith.cmpi ne, %7, %c0_i32_5 : i32
    scf.if %8 {
      %c0_8 = arith.constant 0 : index
      %c0_9 = arith.constant 0 : index
      %12 = vector.load %arg7[%c0_8, %c0_9] : memref<16x32xf32, #tpu.memory_space<vmem>>, vector<16x32xf32>
      %13 = arith.addf %12, %2 : vector<16x32xf32>
      %c0_10 = arith.constant 0 : index
      %c0_11 = arith.constant 0 : index
      %14 = vector.load %arg7[%c0_10, %c0_11] : memref<16x32xf32, #tpu.memory_space<vmem>>, vector<16x32xf32>
      tpu.vector_store %arg7[%c0_10, %c0_11], %13 {strides = array<i32>} : memref<16x32xf32, #tpu.memory_space<vmem>>, vector<16x32xf32>,
    } else {
    }
    %c0_i32_6 = arith.constant 0 : i32
    %9 = arith.cmpi eq, %arg2, %c0_i32_6 : i32
    %10 = arith.extui %9 : i1 to i32
    %c0_i32_7 = arith.constant 0 : i32
    %11 = arith.cmpi ne, %10, %c0_i32_7 : i32
    scf.if %11 {
      %c0_8 = arith.constant 0 : index
      %c0_9 = arith.constant 0 : index
      %12 = vector.load %arg7[%c0_8, %c0_9] : memref<16x32xf32, #tpu.memory_space<vmem>>, vector<16x32xf32>
      %c0_10 = arith.constant 0 : index
      %c0_11 = arith.constant 0 : index
      %13 = vector.load %arg5[%c0_10, %c0_11] : memref<1x32xf32, #tpu.memory_space<vmem>>, vector<1x32xf32>
      %14 = vector.broadcast %13 : vector<1x32xf32> to vector<16x32xf32>
      %15 = arith.addf %12, %14 : vector<16x32xf32>
      %c0_12 = arith.constant 0 : index
      %c0_13 = arith.constant 0 : index
      %16 = vector.load %arg6[%c0_12, %c0_13] : memref<16x32xf32, #tpu.memory_space<vmem>>, vector<16x32xf32>
      tpu.vector_store %arg6[%c0_12, %c0_13], %15 {strides = array<i32>} : memref<16x32xf32, #tpu.memory_space<vmem>>, vector<16x32xf32>,
    } else {
    }
    return
  }
  func.func @transform_0(%arg0: i32, %arg1: i32, %arg2: i32) -> (i32, i32) {
    %c0_i32 = arith.constant 0 : i32
    return %arg0, %arg2 : i32, i32
  }
  func.func @transform_1(%arg0: i32, %arg1: i32, %arg2: i32) -> (i32, i32) {
    %c0_i32 = arith.constant 0 : i32
    return %arg2, %arg1 : i32, i32
  }
  func.func @transform_2(%arg0: i32, %arg1: i32, %arg2: i32) -> (i32, i32) {
    %c0_i32 = arith.constant 0 : i32
    %c0_i32_0 = arith.constant 0 : i32
    return %c0_i32, %arg1 : i32, i32
  }
  func.func @transform_3(%arg0: i32, %arg1: i32, %arg2: i32) -> (i32, i32) {
    %c0_i32 = arith.constant 0 : i32
    return %arg0, %arg1 : i32, i32
  }
}

</mosaic_0001>

<bundles_post_ra>
// kernel: _linearizer_forward.1
= control target key start
LH: loop header
LB: loop body
LE: loop exit
PB: predicated region body
PF: predicated region fallthrough
CT: control target
= control target key end

     0   :  { %vm743_vm0 = vcmask 261120   ;;  %s1248_s1 = inlined_call_operand.vmem [shape: bf16[1024,32], index: 1, kind: input, shape index: {}]   ;;  %s1249_s0 = inlined_call_operand.vmem [shape: bf16[16,1024], index: 0, kind: input, shape index: {}]   ;;  %s1250_s2 = inlined_call_operand.vmem [shape: f32[1,32], index: 2, kind: input, shape index: {}]   ;;  %s1251_s3 = inlined_call_operand.vmem [shape: f32[16,32], index: 3, kind: output, shape index: {}]  }
   0x1   :  { %v939_v0 = vld [vmem:[%s1248_s1 + $0x40] sm:$0xff]   ;;  %v943_v4 = vld [vmem:[%s1248_s1 + $0x48] sm:$0xff]   ;;  %v947_v8 = vld [vmem:[%s1248_s1 + $0x50] sm:$0xff]  }
   0x2   :  { %v940_v1 = vld [vmem:[%s1248_s1 + $0xc0] sm:$0xff]   ;;  %851 = vmatprep.subr.bf16.mxu0 %v939_v0  ;;  %v944_v5 = vld [vmem:[%s1248_s1 + $0xc8] sm:$0xff]   ;;  %v948_v9 = vld [vmem:[%s1248_s1 + $0xd0] sm:$0xff]  }
   0x3   :  { %v941_v2 = vld [vmem:[%s1248_s1] sm:$0xff]   ;;  %873 = vmatprep.subr.bf16.mxu1 %v940_v1  ;;  %v945_v6 = vld [vmem:[%s1248_s1 + $0x8] sm:$0xff]   ;;  %v949_v10 = vld [vmem:[%s1248_s1 + $0x10] sm:$0xff]  }
   0x4   :  { %v942_v3 = vld [vmem:[%s1248_s1 + $0x80] sm:$0xff]   ;;  %852 = vmatpush3.bf16.msra.mxu0 %v941_v2  ;;  %v946_v7 = vld [vmem:[%s1248_s1 + $0x88] sm:$0xff]   ;;  %v950_v11 = vld [vmem:[%s1248_s1 + $0x90] sm:$0xff]  }
   0x5   :  { %874 = vmatpush3.bf16.msra.mxu1 %v942_v3  ;;  %853 = vmatprep.subr.bf16.mxu0 %v943_v4  ;;  %v951_v12 = vld [vmem:[%s1248_s1 + $0x58] sm:$0xff]   ;;  %v955_v16 = vld [vmem:[%s1248_s1 + $0x60] sm:$0xff]   ;;  %v959_v20 = vld [vmem:[%s1248_s1 + $0x68] sm:$0xff]  }
   0x6   :  { %875 = vmatprep.subr.bf16.mxu1 %v944_v5  ;;  %v952_v13 = vld [vmem:[%s1248_s1 + $0xd8] sm:$0xff]   ;;  %v956_v17 = vld [vmem:[%s1248_s1 + $0xe0] sm:$0xff]   ;;  %v960_v21 = vld [vmem:[%s1248_s1 + $0xe8] sm:$0xff]  }
   0x7   :  { %v953_v14 = vld [vmem:[%s1248_s1 + $0x18] sm:$0xff]   ;;  %v957_v18 = vld [vmem:[%s1248_s1 + $0x20] sm:$0xff]   ;;  %v961_v22 = vld [vmem:[%s1248_s1 + $0x28] sm:$0xff]  }
   0x8   :  { %854 = vmatpush3.bf16.msra.mxu0 %v945_v6  ;;  %v954_v15 = vld [vmem:[%s1248_s1 + $0x98] sm:$0xff]   ;;  %v958_v19 = vld [vmem:[%s1248_s1 + $0xa0] sm:$0xff]   ;;  %v962_v23 = vld [vmem:[%s1248_s1 + $0xa8] sm:$0xff]  }
   0x9   :  { %876 = vmatpush3.bf16.msra.mxu1 %v946_v7  ;;  %855 = vmatprep.subr.bf16.mxu0 %v947_v8  ;;  %v963_v24 = vld [vmem:[%s1248_s1 + $0x70] sm:$0xff]   ;;  %v967_v28 = vld [vmem:[%s1248_s1 + $0x78] sm:$0xff]   ;;  %v15_v32 = vld [vmem:[%s1249_s0] sm:$0xff] }
   0xa   :  { %877 = vmatprep.subr.bf16.mxu1 %v948_v9  ;;  %v964_v25 = vld [vmem:[%s1248_s1 + $0xf0] sm:$0xff]   ;;  %v968_v29 = vld [vmem:[%s1248_s1 + $0xf8] sm:$0xff]   ;;  %v19_v33 = vld [vmem:[%s1249_s0 + $0x20] sm:$0xff] }
   0xb   :  { %v965_v26 = vld [vmem:[%s1248_s1 + $0x30] sm:$0xff]   ;;  %v969_v30 = vld [vmem:[%s1248_s1 + $0x38] sm:$0xff]   ;;  %v16_v34 = vld [vmem:[%s1249_s0 + $0x8] sm:$0xff]  ;;  %v778_v35 = vcombine.low %v15_v32, %v19_v33  ;;  %v779_v36 = vcombine.high %v15_v32, %v19_v33 }
   0xc   :  { %856 = vmatpush3.bf16.msra.mxu0 %v949_v10  ;;  %v966_v27 = vld [vmem:[%s1248_s1 + $0xb0] sm:$0xff]   ;;  %v970_v31 = vld [vmem:[%s1248_s1 + $0xb8] sm:$0xff]   ;;  %v20_v37 = vld [vmem:[%s1249_s0 + $0x28] sm:$0xff] }
   0xd   :  { %878 = vmatpush3.bf16.msra.mxu1 %v950_v11  ;;  %857 = vmatprep.subr.bf16.mxu0 %v951_v12  ;;  %v780_v38 = vcombine.low %v16_v34, %v20_v37  ;;  %v781_v39 = vcombine.high %v16_v34, %v20_v37  ;;  %v971_v40 = vld [vmem:[%s1248_s1 + $0x140] sm:$0xff]   ;;  %v975_v44 = vld [vmem:[%s1248_s1 + $0x148] sm:$0xff]   ;;  %v979_v48 = vld [vmem:[%s1248_s1 + $0x150] sm:$0xff]  }
   0xe   :  { %879 = vmatprep.subr.bf16.mxu1 %v952_v13  ;;  %607 = vmatprep.mubr.bf16.mxu0 %v779_v36  ;;  %v972_v41 = vld [vmem:[%s1248_s1 + $0x1c0] sm:$0xff]   ;;  %v976_v45 = vld [vmem:[%s1248_s1 + $0x1c8] sm:$0xff]   ;;  %v980_v49 = vld [vmem:[%s1248_s1 + $0x1d0] sm:$0xff]  }
   0xf   :  { %648 = vmatprep.mubr.bf16.mxu1 %v781_v39  ;;  %v973_v42 = vld [vmem:[%s1248_s1 + $0x100] sm:$0xff]   ;;  %v977_v46 = vld [vmem:[%s1248_s1 + $0x108] sm:$0xff]   ;;  %v981_v50 = vld [vmem:[%s1248_s1 + $0x110] sm:$0xff]  }
  0x10   :  { %858 = vmatpush3.bf16.msra.mxu0 %v953_v14  ;;  %v974_v43 = vld [vmem:[%s1248_s1 + $0x180] sm:$0xff]   ;;  %v978_v47 = vld [vmem:[%s1248_s1 + $0x188] sm:$0xff]   ;;  %v982_v51 = vld [vmem:[%s1248_s1 + $0x190] sm:$0xff]  }
  0x11   :  { %880 = vmatpush3.bf16.msra.mxu1 %v954_v15  ;;  %859 = vmatprep.subr.bf16.mxu0 %v955_v16  ;;  %v983_v52 = vld [vmem:[%s1248_s1 + $0x158] sm:$0xff]   ;;  %v987_v56 = vld [vmem:[%s1248_s1 + $0x160] sm:$0xff]   ;;  %v991_v60 = vld [vmem:[%s1248_s1 + $0x168] sm:$0xff]  }
  0x12   :  { %881 = vmatprep.subr.bf16.mxu1 %v956_v17  ;;  %v984_v53 = vld [vmem:[%s1248_s1 + $0x1d8] sm:$0xff]   ;;  %v988_v57 = vld [vmem:[%s1248_s1 + $0x1e0] sm:$0xff]   ;;  %v992_v61 = vld [vmem:[%s1248_s1 + $0x1e8] sm:$0xff]  }
  0x13   :  { %v985_v54 = vld [vmem:[%s1248_s1 + $0x118] sm:$0xff]   ;;  %v989_v58 = vld [vmem:[%s1248_s1 + $0x120] sm:$0xff]   ;;  %v993_v62 = vld [vmem:[%s1248_s1 + $0x128] sm:$0xff]  }
  0x14   :  { %860 = vmatpush3.bf16.msra.mxu0 %v957_v18  ;;  %v986_v55 = vld [vmem:[%s1248_s1 + $0x198] sm:$0xff]   ;;  %v990_v59 = vld [vmem:[%s1248_s1 + $0x1a0] sm:$0xff]   ;;  %v994_v63 = vld [vmem:[%s1248_s1 + $0x1a8] sm:$0xff]  }
  0x15   :  { %882 = vmatpush3.bf16.msra.mxu1 %v958_v19  ;;  %861 = vmatprep.subr.bf16.mxu0 %v959_v20  ;;  %v995_v0 = vld [vmem:[%s1248_s1 + $0x170] sm:$0xff]   ;;  %v999_v4 = vld [vmem:[%s1248_s1 + $0x178] sm:$0xff]  }
  0x16   :  { %883 = vmatprep.subr.bf16.mxu1 %v960_v21  ;;  %v996_v1 = vld [vmem:[%s1248_s1 + $0x1f0] sm:$0xff]   ;;  %v1000_v5 = vld [vmem:[%s1248_s1 + $0x1f8] sm:$0xff]  }
  0x17   :  { %v997_v2 = vld [vmem:[%s1248_s1 + $0x130] sm:$0xff]   ;;  %v1001_v6 = vld [vmem:[%s1248_s1 + $0x138] sm:$0xff]  }
  0x18   :  { %862 = vmatpush3.bf16.msra.mxu0 %v961_v22  ;;  %v998_v3 = vld [vmem:[%s1248_s1 + $0x1b0] sm:$0xff]   ;;  %v1002_v7 = vld [vmem:[%s1248_s1 + $0x1b8] sm:$0xff]  }
  0x19   :  { %884 = vmatpush3.bf16.msra.mxu1 %v962_v23  ;;  %863 = vmatprep.subr.bf16.mxu0 %v963_v24  ;;  %v17_v8 = vld [vmem:[%s1249_s0 + $0x10] sm:$0xff]  ;;  %v18_v12 = vld [vmem:[%s1249_s0 + $0x18] sm:$0xff] }
  0x1a   :  { %885 = vmatprep.subr.bf16.mxu1 %v964_v25  ;;  %v21_v9 = vld [vmem:[%s1249_s0 + $0x30] sm:$0xff]  ;;  %v22_v13 = vld [vmem:[%s1249_s0 + $0x38] sm:$0xff] }
  0x1b   :  { %v782_v10 = vcombine.low %v17_v8, %v21_v9  ;;  %v783_v11 = vcombine.high %v17_v8, %v21_v9  ;;  %v784_v14 = vcombine.low %v18_v12, %v22_v13  ;;  %v785_v15 = vcombine.high %v18_v12, %v22_v13 }
  0x1c   :  { %864 = vmatpush3.bf16.msra.mxu0 %v965_v26 }
  0x1d   :  { %886 = vmatpush3.bf16.msra.mxu1 %v966_v27  ;;  %865 = vmatprep.subr.bf16.mxu0 %v967_v28 }
  0x1e   :  { %887 = vmatprep.subr.bf16.mxu1 %v968_v29 }
  0x20   :  { %866 = vmatpush3.bf16.msra.mxu0 %v969_v30 }
  0x21   :  { %888 = vmatpush3.bf16.msra.mxu1 %v970_v31  ;;  %895 = vmatprep.subr.bf16.mxu0 %v971_v40 }
  0x22   :  { %917 = vmatprep.subr.bf16.mxu1 %v972_v41 }
  0x23   :  { %608 = vmatmul.mubr.bf16.vlgmr.msra.gmra.mrb[0].mxu0 %v778_v35 }
  0x24   :  { %649 = vmatmul.mubr.bf16.vlgmr.msra.gmra.mrb[0].mxu1 %v780_v38  ;;  %896 = vmatpush3.bf16.msra.mxu0 %v973_v42 }
  0x25   :  { %918 = vmatpush3.bf16.msra.mxu1 %v974_v43  ;;  %897 = vmatprep.subr.bf16.mxu0 %v975_v44 }
  0x26   :  { %919 = vmatprep.subr.bf16.mxu1 %v976_v45  ;;  %689 = vmatprep.mubr.bf16.mxu0 %v783_v11 }
  0x27   :  { %730 = vmatprep.mubr.bf16.mxu1 %v785_v15 }
  0x28   :  { %898 = vmatpush3.bf16.msra.mxu0 %v977_v46  ;;  %v850_v46 = vld [vmem:[%s1250_s2] ss:$0 sm:$0xff] }
  0x29   :  { %920 = vmatpush3.bf16.msra.mxu1 %v978_v47  ;;  %899 = vmatprep.subr.bf16.mxu0 %v979_v48 }
  0x2a   :  { %921 = vmatprep.subr.bf16.mxu1 %v980_v49 }
  0x2c   :  { %900 = vmatpush3.bf16.msra.mxu0 %v981_v50 }
  0x2d   :  { %922 = vmatpush3.bf16.msra.mxu1 %v982_v51  ;;  %901 = vmatprep.subr.bf16.mxu0 %v983_v52 }
  0x2e   :  { %923 = vmatprep.subr.bf16.mxu1 %v984_v53 }
  0x30   :  { %902 = vmatpush3.bf16.msra.mxu0 %v985_v54 }
  0x31   :  { %924 = vmatpush3.bf16.msra.mxu1 %v986_v55  ;;  %903 = vmatprep.subr.bf16.mxu0 %v987_v56 }
  0x32   :  { %925 = vmatprep.subr.bf16.mxu1 %v988_v57 }
  0x34   :  { %904 = vmatpush3.bf16.msra.mxu0 %v989_v58 }
  0x35   :  { %926 = vmatpush3.bf16.msra.mxu1 %v990_v59  ;;  %905 = vmatprep.subr.bf16.mxu0 %v991_v60 }
  0x36   :  { %927 = vmatprep.subr.bf16.mxu1 %v992_v61 }
  0x38   :  { %906 = vmatpush3.bf16.msra.mxu0 %v993_v62 }
  0x39   :  { %928 = vmatpush3.bf16.msra.mxu1 %v994_v63  ;;  %907 = vmatprep.subr.bf16.mxu0 %v995_v0 }
  0x3a   :  { %929 = vmatprep.subr.bf16.mxu1 %v996_v1 }
  0x3c   :  { %908 = vmatpush3.bf16.msra.mxu0 %v997_v2 }
  0x3d   :  { %930 = vmatpush3.bf16.msra.mxu1 %v998_v3  ;;  %909 = vmatprep.subr.bf16.mxu0 %v999_v4 }
  0x3e   :  { %931 = vmatprep.subr.bf16.mxu1 %v1000_v5 }
  0x40   :  { %910 = vmatpush3.bf16.msra.mxu0 %v1001_v6 }
  0x41   :  { %932 = vmatpush3.bf16.msra.mxu1 %v1002_v7 }
  0x43   :  { %690 = vmatmul.mubr.bf16.vlgmr.msra.gmra.mrb[4].mxu0 %v782_v10 }
  0x44   :  { %731 = vmatmul.mubr.bf16.vlgmr.msra.gmra.mrb[4].mxu1 %v784_v14 }
  0xf6   :  { %v867_v16 = vpop.f32.mrb[0].mxu0 }
  0xf7   :  { %v889_v17 = vpop.f32.mrb[0].mxu1  ;;  %v868_v18 = vpop.f32.mrb[1].mxu0 }
  0xf8   :  { %v869_v19 = vadd.f32 %v868_v18, %v867_v16  ;;  %v890_v20 = vpop.f32.mrb[1].mxu1  ;;  %v870_v21 = vpop.f32.mrb[2].mxu0 }
  0xf9   :  { %v891_v22 = vadd.f32 %v890_v20, %v889_v17  ;;  %v892_v23 = vpop.f32.mrb[2].mxu1  ;;  %v871_v24 = vpop.f32.mrb[3].mxu0 }
  0xfa   :  { %v872_v25 = vadd.f32 %v871_v24, %v870_v21  ;;  %v893_v26 = vpop.f32.mrb[3].mxu1 }
  0xfb   :  { %v651_v27 = vadd.f32 %v891_v22, %v869_v19  ;;  %v894_v28 = vadd.f32 %v893_v26, %v892_v23 }
  0xfd   :  { %v654_v29 = vadd.f32 %v894_v28, %v872_v25 }
 0x116   :  { %v911_v30 = vpop.f32.mrb[4].mxu0 }
 0x117   :  { %v933_v31 = vpop.f32.mrb[4].mxu1  ;;  %v912_v32 = vpop.f32.mrb[5].mxu0 }
 0x118   :  { %v913_v33 = vadd.f32 %v912_v32, %v911_v30  ;;  %v934_v34 = vpop.f32.mrb[5].mxu1  ;;  %v914_v35 = vpop.f32.mrb[6].mxu0 }
 0x119   :  { %v935_v36 = vadd.f32 %v934_v34, %v933_v31  ;;  %v936_v37 = vpop.f32.mrb[6].mxu1  ;;  %v915_v38 = vpop.f32.mrb[7].mxu0 }
 0x11a   :  { %v692_v39 = vadd.f32 %v913_v33, %v651_v27  ;;  %v916_v40 = vadd.f32 %v915_v38, %v914_v35  ;;  %v937_v41 = vpop.f32.mrb[7].mxu1 }
 0x11b   :  { %v938_v42 = vadd.f32 %v937_v41, %v936_v37 }
 0x11c   :  { %v733_v43 = vadd.f32 %v935_v36, %v692_v39  ;;  %v695_v44 = vadd.f32 %v916_v40, %v654_v29 }
 0x11e   :  { %744 = vst.msk [vmem:[#allocation2] sm:$0xff] %vm743_vm0, %v733_v43  ;;  %v736_v45 = vadd.f32 %v938_v42, %v695_v44 }
 0x120   :  { %745 = vst.msk [vmem:[#allocation2 + $0x8] sm:$0xff] %vm743_vm0, %v736_v45 }
 0x125   :  { %v760_v47 = vld [vmem:[#allocation2] sm:$0xff] }
 0x126   :  { %v769_v48 = vadd.f32 %v850_v46, %v760_v47 }
 0x127   :  { %v761_v49 = vld [vmem:[#allocation2 + $0x8] sm:$0xff] }
 0x128   :  { %772 = vst.msk [vmem:[%s1251_s3] sm:$0xff] %vm743_vm0, %v769_v48  ;;  %v770_v50 = vadd.f32 %v850_v46, %v761_v49 }
 0x12a   :  { %773 = vst.msk [vmem:[%s1251_s3 + $0x8] sm:$0xff] %vm743_vm0, %v770_v50 }

</bundles_post_ra>
